<compile_context>
chip_gen: v7x
topology: tpu7x:2x2x1
jax: 0.10.0
libtpu: 0.0.40
codegen_flags: <defaults>
</compile_context>

<pallas_src>
from collections.abc import Iterable, Mapping, Sequence
from typing import Any, Callable

import jax
import jax.numpy as jnp
from jax.experimental import pallas as pl
from jax.experimental.pallas import tpu as pltpu


# ----------------------------------------------------------------------------
# helpers
# ----------------------------------------------------------------------------
def _round_up(x: int, m: int) -> int:
    return ((x + m - 1) // m) * m


def _largest_tile(total: int, preferred: int, unit: int) -> int:
    """Largest multiple of `unit` <= preferred that divides `total`.

    Assumes total % unit == 0 (guaranteed by the pre-padding below)."""
    t = max(unit, min(preferred, total))
    t = (t // unit) * unit
    while total % t:
        t -= unit
    return t


# ----------------------------------------------------------------------------
# Pallas kernels: Linear  o = x @ w + b  (MXU, f32 accumulation)
# ----------------------------------------------------------------------------
def _linear_single_kernel(x_ref, w_ref, b_ref, o_ref):
    # Whole problem in one grid step: no scratch, no predicates, one store.
    acc = jnp.dot(x_ref[...].astype(w_ref.dtype), w_ref[...],
                  preferred_element_type=jnp.float32)
    o_ref[...] = (acc + b_ref[...].astype(jnp.float32)).astype(o_ref.dtype)


def _linear_tiled_kernel(x_ref, w_ref, b_ref, o_ref, acc_ref):
    k = pl.program_id(2)

    @pl.when(k == 0)
    def _init():
        # Bias folded into the accumulator init: saves the epilogue VPU add
        # and per-tile broadcast.
        acc_ref[...] = jnp.broadcast_to(
            b_ref[...].astype(jnp.float32), acc_ref.shape)

    acc_ref[...] += jnp.dot(x_ref[...].astype(w_ref.dtype), w_ref[...],
                            preferred_element_type=jnp.float32)

    @pl.when(k == pl.num_programs(2) - 1)
    def _finalize():
        o_ref[...] = acc_ref[...].astype(o_ref.dtype)


_SINGLE_STEP_BYTES = 2 << 20   # fast-path threshold (operands + output bytes)
_VMEM_CAP = 64 << 20           # v7x physical VMEM per TensorCore


def pallas_linear(
    x: jax.Array,
    w: jax.Array,
    b: jax.Array,
    *,
    n_valid: int | None = None,
    tm_pref: int = 256,
    tn_pref: int = 256,
    tk_pref: int = 512,
) -> jax.Array:
    """x: (M, K).  w: (Kp, Np) pre-padded (Kp, Np multiples of 128), typically
    bf16.  b: (1, Np).  Returns (M, n_valid) in x.dtype."""
    M, K = x.shape
    Kp, Np = w.shape
    assert K <= Kp and b.shape == (1, Np)
    n_valid = Np if n_valid is None else n_valid
    out_dtype = x.dtype
    isz_x = jnp.dtype(x.dtype).itemsize
    isz_w = jnp.dtype(w.dtype).itemsize
    isz_o = jnp.dtype(out_dtype).itemsize

    Mp = _round_up(M, 8)
    total_bytes = Mp * Kp * isz_x + Kp * Np * isz_w + Np * isz_w + Mp * Np * isz_o
    single_step = total_bytes <= _SINGLE_STEP_BYTES

    if single_step:
        tm, tn, tk = Mp, Np, Kp
    else:
        tm = _largest_tile(Mp, tm_pref, 8)
        tn = _largest_tile(Np, tn_pref, 128)
        tk = _largest_tile(Kp, tk_pref, 128)
        # v7x megacore: keep at least one 'parallel' axis with >= 2 tiles.
        if Mp // tm == 1 and Np // tn == 1 and Np >= 256:
            tn = _largest_tile(Np, Np // 2, 128)

    # Only x is (cheaply) padded per call; w/b were padded once at init.
    if (Mp, Kp) != (M, K):
        x = jnp.pad(x, ((0, Mp - M), (0, Kp - K)))

    grid_m, grid_n, grid_k = Mp // tm, Np // tn, Kp // tk

    cost = pl.CostEstimate(
        flops=2 * Mp * Np * Kp,
        transcendentals=0,
        bytes_accessed=(Mp * Kp * isz_x * grid_n          # x re-read per N tile
                        + Kp * Np * isz_w * grid_m        # w re-read per M tile
                        + Np * isz_w * grid_m * grid_k    # bias re-reads
                        + Mp * Np * isz_o),               # output written once
    )
    vmem_need = (2 * (tm * tk * isz_x + tk * tn * isz_w + tn * isz_w
                      + tm * tn * isz_o) + tm * tn * 4)
    vmem_limit = int(min(_VMEM_CAP, max(2 * vmem_need, 16 << 20)))

    if single_step:
        out = pl.pallas_call(
            _linear_single_kernel,
            out_shape=jax.ShapeDtypeStruct((Mp, Np), out_dtype),
            grid_spec=pltpu.PrefetchScalarGridSpec(
                num_scalar_prefetch=0,
                grid=(1,),
                in_specs=[pl.BlockSpec((Mp, Kp), lambda i: (0, 0)),
                          pl.BlockSpec((Kp, Np), lambda i: (0, 0)),
                          pl.BlockSpec((1, Np), lambda i: (0, 0))],
                out_specs=pl.BlockSpec((Mp, Np), lambda i: (0, 0)),
            ),
            compiler_params=pltpu.CompilerParams(
                dimension_semantics=("arbitrary",),
                vmem_limit_bytes=vmem_limit,
            ),
            cost_estimate=cost,
        )(x, w, b)
    else:
        out = pl.pallas_call(
            _linear_tiled_kernel,
            out_shape=jax.ShapeDtypeStruct((Mp, Np), out_dtype),
            grid_spec=pltpu.PrefetchScalarGridSpec(
                num_scalar_prefetch=0,
                grid=(grid_m, grid_n, grid_k),
                in_specs=[pl.BlockSpec((tm, tk), lambda i, j, k: (i, k)),
                          pl.BlockSpec((tk, tn), lambda i, j, k: (k, j)),
                          pl.BlockSpec((1, tn), lambda i, j, k: (0, j))],
                out_specs=pl.BlockSpec((tm, tn), lambda i, j, k: (i, j)),
                scratch_shapes=[pltpu.VMEM((tm, tn), jnp.float32)],
            ),
            compiler_params=pltpu.CompilerParams(
                dimension_semantics=("parallel", "parallel", "arbitrary"),
                vmem_limit_bytes=vmem_limit,
            ),
            cost_estimate=cost,
        )(x, w, b)

    if (M, n_valid) != (Mp, Np):
        out = out[:M, :n_valid]
    return out


# ----------------------------------------------------------------------------
# Sub-module: fused multi-head Linear (one matmul for all heads sharing x)
# ----------------------------------------------------------------------------
class PallasMultiHeadLinear:
    """Several Linear heads sharing one input, fused into a single MXU matmul.

    Weights/bias are stored bf16 and pre-padded ONCE to lane-aligned shapes, so
    calls emit no weight-pad pass; accumulation stays f32 inside the kernel.
    """
    # TODO(synk): fp8 weight storage for the v7x fp8 MXU path not implemented.

    def __init__(self, in_features: int, out_features: Sequence[int],
                 key: jax.Array, weight_dtype=jnp.bfloat16):
        self.in_features = int(in_features)
        self.out_features = tuple(int(n) for n in out_features)
        n_total = sum(self.out_features)
        kw, kb = jax.random.split(key)
        scale = 1.0 / jnp.sqrt(jnp.float32(in_features))
        w = jax.random.uniform(kw, (in_features, n_total), jnp.float32, -1.0, 1.0) * scale
        b = jax.random.uniform(kb, (1, n_total), jnp.float32, -1.0, 1.0) * scale
        kp = _round_up(in_features, 128)
        np_ = _round_up(n_total, 128)
        self.weight = jnp.pad(w, ((0, kp - in_features), (0, np_ - n_total))).astype(weight_dtype)
        self.bias = jnp.pad(b, ((0, 0), (0, np_ - n_total))).astype(weight_dtype)
        self._n_total = n_total

    def __call__(self, x: jax.Array):
        out = pallas_linear(x, self.weight, self.bias, n_valid=self._n_total)
        if len(self.out_features) == 1:
            return out
        pieces, off = [], 0
        for n in self.out_features:
            pieces.append(out[:, off:off + n])
            off += n
        return tuple(pieces)


# ----------------------------------------------------------------------------
# GraphBuilder (JAX port of the PyTorch nn.Module)
# ----------------------------------------------------------------------------
class GraphBuilder:
    def __init__(self, graph_name: str, output_names: Iterable[str] | None = ()):
        self.graph_name = graph_name
        self.output_names = list(output_names) if output_names is not None else None
        self.info: dict[str, Any] = {}
        self._named_submodules: dict[str, Any] = {}
        self._forward_pre_hooks: list[Callable] = []

    # ---- forward --------------------------------------------------------
    def __call__(self, *args, **kwargs):
        return self.forward(*args, **kwargs)

    def forward(self, *args, **kwargs):
        if args:
            kwargs.update(dict(args))
        # replicate nn.Module forward-pre-hook (with_kwargs=True) semantics
        for hook in self._forward_pre_hooks:
            result = hook(self, (), kwargs)
            if result is not None:
                _, kwargs = result
        if self.output_names is None:
            self.output_names = sorted(kwargs.keys())
        # Pure routing: no copies, no extra kernels (matches PyTorch forward).
        return tuple(kwargs[name] for name in self.output_names)

    # ---- graph construction --------------------------------------------
    def add_module_to_graph(
        self,
        module: Any,
        module_name: str,
        input_names: str | Iterable[str] | Mapping[str, str],
        output_names: str | Iterable[str],
        method_name: str = "__call__",
        extra_kwargs: dict[str, Any] | None = None,
        info: dict[str, Any] | None = None,
        expose_outputs: bool = True,
        prepend: bool = False,
    ):
        if isinstance(input_names, str):
            input_names = {input_names: input_names}
        elif not isinstance(input_names, Mapping):
            input_names = {name: name for name in input_names}
        if isinstance(output_names, str):
            output_names = (output_names,)
        output_names = tuple(output_names)
        if module_name in self._named_submodules:
            raise ValueError(f"Module with name '{module_name}' already exists in the graph.")
        self._named_submodules[module_name] = module

        def hook(_: "GraphBuilder", args: tuple, kwargs: dict[str, Any]):
            if args:
                kwargs.update(dict(args))
            if input_names is not None:
                inputs = {in_name: kwargs[arg_name] for in_name, arg_name in input_names.items()}
            else:
                inputs = kwargs
            outputs = getattr(module, method_name)(**inputs, **(extra_kwargs or {}))
            if not isinstance(outputs, tuple):
                outputs = (outputs,)
            outputs = [o for o in outputs if o is not None]
            if len(outputs) != len(output_names):
                raise ValueError("output_names and module outputs length mismatch (strict zip)")
            named_outputs = dict(zip(output_names, outputs))
            # TODO(synk): cusrl.Module.intermediate_repr propagation not ported
            # (no cusrl Module class in this synthetic environment).
            kwargs.update(named_outputs)
            return ((), kwargs)

        if info is not None:
            self.info.update(info)
        if expose_outputs and self.output_names is not None:
            for out_name in output_names:
                if out_name not in self.output_names:
                    self.output_names.append(out_name)
        if prepend:
            self._forward_pre_hooks.insert(0, hook)
        else:
            self._forward_pre_hooks.append(hook)

    # TODO(synk): export_jit / export_onnx (torch.jit / ONNX serialization)
    # have no Pallas equivalent and are not ported.


# ----------------------------------------------------------------------------
# Demo / self-test
# ----------------------------------------------------------------------------
if __name__ == "__main__":
    key = jax.random.PRNGKey(0)
    k_obs, k_heads, k_x2, k_w2, k_b2 = jax.random.split(key, 5)

    batch, obs_dim, act_dim = 16, 512, 128
    obs = jax.random.normal(k_obs, (batch, obs_dim), jnp.float32)

    # Fused policy + value head: one matmul, outputs sliced and routed by the
    # hook machinery under the names ("action", "value").
    graph = GraphBuilder("policy_graph", output_names=["observation"])
    heads = PallasMultiHeadLinear(obs_dim, (act_dim, 1), k_heads)
    graph.add_module_to_graph(
        heads,
        module_name="heads",
        input_names={"x": "observation"},
        output_names=("action", "value"),
        info={"action_dim": act_dim},
    )

    outputs = jax.block_until_ready(graph(observation=obs))
    assert graph.output_names == ["observation", "action", "value"]
    obs_out, action_out, value_out = outputs

    # Routing must be a pure pass-through (no copy kernel).
    assert obs_out is obs, "routing should return the input array itself"

    # Reference (pure JAX, f32 accumulation on bf16-quantized operands).
    hi = jax.lax.Precision.HIGHEST
    w_f32 = heads.weight.astype(jnp.float32)[:obs_dim]
    b_f32 = heads.bias.astype(jnp.float32)
    obs_q = obs.astype(jnp.bfloat16).astype(jnp.float32)
    ref_full = jnp.dot(obs_q, w_f32, precision=hi) + b_f32
    ref_action = ref_full[:, :act_dim]
    ref_value = ref_full[:, act_dim:act_dim + 1]
    assert action_out.shape == (batch, act_dim)
    assert value_out.shape == (batch, 1)
    assert jnp.allclose(action_out, ref_action, atol=1e-2, rtol=1e-2), "policy head mismatch"
    assert jnp.allclose(value_out, ref_value, atol=1e-2, rtol=1e-2), "value head mismatch"

    # Also exercise the tiled (multi-step accumulator) path: grid (2, 2, 2).
    M2, K2, N2 = 512, 1024, 512
    x2 = jax.random.normal(k_x2, (M2, K2), jnp.float32)
    w2 = (jax.random.normal(k_w2, (K2, N2), jnp.float32)
          / jnp.sqrt(jnp.float32(K2))).astype(jnp.bfloat16)
    b2 = (jax.random.normal(k_b2, (1, N2), jnp.float32) * 0.1).astype(jnp.bfloat16)
    out2 = jax.block_until_ready(pallas_linear(x2, w2, b2))
    ref2 = (jnp.dot(x2.astype(jnp.bfloat16).astype(jnp.float32),
                    w2.astype(jnp.float32), precision=hi)
            + b2.astype(jnp.float32))
    assert out2.shape == (M2, N2)
    assert jnp.allclose(out2, ref2, atol=2e-2, rtol=2e-2), "tiled matmul mismatch"

    print("KERNEL_OK")
</pallas_src>

<mosaic_0001>
module attributes {stable_mosaic.version = 11 : i64} {
  func.func @_linear_single_kernel(%arg0: i32, %arg1: memref<16x512xf32, #tpu.memory_space<vmem>>, %arg2: memref<512x256xbf16, #tpu.memory_space<vmem>>, %arg3: memref<1x256xbf16, #tpu.memory_space<vmem>>, %arg4: memref<16x256xf32, #tpu.memory_space<vmem>>) attributes {dimension_semantics = [#tpu.dimension_semantics<arbitrary>], iteration_bounds = array<i64: 1>, scalar_prefetch = 0 : i64, scratch_operands = 0 : i64, tpu.core_type = #tpu.core_type<tc>, window_params = [{pipeline_mode = #tpu.pipeline_mode<synchronous>, transform_indices = @transform_0, window_bounds = array<i64: 16, 512>}, {pipeline_mode = #tpu.pipeline_mode<synchronous>, transform_indices = @transform_1, window_bounds = array<i64: 512, 256>}, {pipeline_mode = #tpu.pipeline_mode<synchronous>, transform_indices = @transform_2, window_bounds = array<i64: 1, 256>}, {pipeline_mode = #tpu.pipeline_mode<synchronous>, transform_indices = @transform_3, window_bounds = array<i64: 16, 256>}]} {
    %c0 = arith.constant 0 : index
    %c0_0 = arith.constant 0 : index
    %0 = vector.load %arg1[%c0, %c0_0] : memref<16x512xf32, #tpu.memory_space<vmem>>, vector<16x512xf32>
    %1 = arith.truncf %0 : vector<16x512xf32> to vector<16x512xbf16>
    %c0_1 = arith.constant 0 : index
    %c0_2 = arith.constant 0 : index
    %2 = vector.load %arg2[%c0_1, %c0_2] : memref<512x256xbf16, #tpu.memory_space<vmem>>, vector<512x256xbf16>
    %cst = arith.constant dense<0.000000e+00> : vector<16x256xf32>
    %3 = tpu.matmul %1, %2, %cst {dimension_numbers = #tpu.dot_dimension_numbers<[1], [0], [0], [1], [0, 0, 1, 1], [], []>} : vector<16x512xbf16>, vector<512x256xbf16>, vector<16x256xf32> -> vector<16x256xf32>
    %c0_3 = arith.constant 0 : index
    %c0_4 = arith.constant 0 : index
    %4 = vector.load %arg3[%c0_3, %c0_4] : memref<1x256xbf16, #tpu.memory_space<vmem>>, vector<1x256xbf16>
    %5 = arith.extf %4 : vector<1x256xbf16> to vector<1x256xf32>
    %6 = vector.broadcast %5 : vector<1x256xf32> to vector<16x256xf32>
    %7 = arith.addf %3, %6 : vector<16x256xf32>
    %c0_5 = arith.constant 0 : index
    %c0_6 = arith.constant 0 : index
    %8 = vector.load %arg4[%c0_5, %c0_6] : memref<16x256xf32, #tpu.memory_space<vmem>>, vector<16x256xf32>
    tpu.vector_store %arg4[%c0_5, %c0_6], %7 {strides = array<i32>} : memref<16x256xf32, #tpu.memory_space<vmem>>, vector<16x256xf32>,
    return
  }
  func.func @transform_0(%arg0: i32) -> (i32, i32) {
    %c0_i32 = arith.constant 0 : i32
    %c0_i32_0 = arith.constant 0 : i32
    %c0_i32_1 = arith.constant 0 : i32
    return %c0_i32, %c0_i32_0 : i32, i32
  }
  func.func @transform_1(%arg0: i32) -> (i32, i32) {
    %c0_i32 = arith.constant 0 : i32
    %c0_i32_0 = arith.constant 0 : i32
    %c0_i32_1 = arith.constant 0 : i32
    return %c0_i32, %c0_i32_0 : i32, i32
  }
  func.func @transform_2(%arg0: i32) -> (i32, i32) {
    %c0_i32 = arith.constant 0 : i32
    %c0_i32_0 = arith.constant 0 : i32
    %c0_i32_1 = arith.constant 0 : i32
    return %c0_i32, %c0_i32_0 : i32, i32
  }
  func.func @transform_3(%arg0: i32) -> (i32, i32) {
    %c0_i32 = arith.constant 0 : i32
    %c0_i32_0 = arith.constant 0 : i32
    %c0_i32_1 = arith.constant 0 : i32
    return %c0_i32, %c0_i32_0 : i32, i32
  }
}

</mosaic_0001>

<bundles_post_ra>
// kernel: tpu_custom_call.1
= control target key start
LH: loop header
LB: loop body
LE: loop exit
PB: predicated region body
PF: predicated region fallthrough
CT: control target
= control target key end

     0   :  { %8 = vsyncpa [#allocation3], 0  ;;  %s885_s0 = inlined_call_operand.hbm [shape: f32[16,512], index: 0, kind: input, shape index: {}]   ;;  %s886_s1 = inlined_call_operand.hbm [shape: bf16[512,256], index: 1, kind: input, shape index: {}]   ;;  %s887_s2 = inlined_call_operand.vmem [shape: bf16[1,256], index: 2, kind: input, shape index: {}]   ;;  %s888_s3 = inlined_call_operand.hbm [shape: f32[16,256], index: 3, kind: output, shape index: {}]  }
   0x1   :  { %9 = vsyncpa [#allocation6], 0 }
   0x2   :  { %10 = vsyncpa [#allocation4], 0  ;;  %s817_s12 = smov [#allocation2]   ;;  %s745_s16 = scalar_lea.hbm %s885_s0, 1024 }
   0x3   :  { %s16_s13 = sshll.u32 %s817_s12, 4  ;;  %p746_p0 = scmp.ne.s32.totalorder %s885_s0, %s745_s16  ;;  %s17_s13 = int_to_ptr.vmem [resolvable:$true] %s16_s13 }
   0x4   :  { %p749_p1 = scmp.lt.u32.totalorder %s745_s16, %s885_s0 }
   0x6   :  { %p751_p2 = pnand %p749_p1, %p746_p0 }
   0x8   :  { %754 = shalt.err (!%p751_p2)
}
   0x9   :  { %s755_s21 = scalar_lea.vmem %s17_s13, 1024  ;;  %p760_p4 = scmp.lt.s32.totalorder %s17_s13, %s17_s13 }
   0xa   :  { %p756_p3 = scmp.ne.s32.totalorder %s17_s13, %s755_s21  ;;  %p761_p5 = scmp.lt.s32.totalorder %s755_s21, %s755_s21 }
   0xc   :  { %p762_p6 = por %p761_p5, %p760_p4 }
   0xe   :  { %p763_p7 = pnand %p762_p6, %p756_p3 }
  0x10   :  { %766 = shalt.err (!%p763_p7)
}
  0x11   :  { %s818_s22 = smov 512   ;;  %s819_s23 = smov 32  }
  0x12   :  { %22 = dma.hbm_to_vmem [thread:$0]  %s885_s0, 1024, %s17_s13, [#allocation3], %s818_s22, %s818_s22, %s819_s23  }
  0x13   :  { %s820_s26 = smov [#allocation5]   ;;  %s767_s30 = scalar_lea.hbm %s886_s1, 8192 }
  0x14   :  { %s28_s27 = sshll.u32 %s820_s26, 4  ;;  %p768_p8 = scmp.ne.s32.totalorder %s886_s1, %s767_s30  ;;  %s29_s27 = int_to_ptr.vmem [resolvable:$true] %s28_s27 }
  0x15   :  { %p771_p9 = scmp.lt.u32.totalorder %s767_s30, %s886_s1 }
  0x17   :  { %p773_p10 = pnand %p771_p9, %p768_p8 }
  0x19   :  { %776 = shalt.err (!%p773_p10)
}
  0x1a   :  { %s777_s8 = scalar_lea.vmem %s29_s27, 8192  ;;  %p782_p12 = scmp.lt.s32.totalorder %s29_s27, %s29_s27 }
  0x1b   :  { %p778_p11 = scmp.ne.s32.totalorder %s29_s27, %s777_s8  ;;  %p783_p13 = scmp.lt.s32.totalorder %s777_s8, %s777_s8 }
  0x1d   :  { %p784_p0 = por %p783_p13, %p782_p12 }
  0x1f   :  { %p785_p1 = pnand %p784_p0, %p778_p11 }
  0x21   :  { %788 = shalt.err (!%p785_p1)
}
  0x22   :  { %s821_s0 = smov 128   ;;  %s822_s9 = smov 8  }
  0x23   :  { %34 = dma.hbm_to_vmem [thread:$0]  %s886_s1, 8192, %s29_s27, [#allocation6], %s821_s0, %s821_s0, %s822_s9  }
  0x24   :  { %811 = dma.done.wait [#allocation3], 1024  }
  0x25   :  { %812 = vsyncadd [#allocation3], 4294966272 }
  0x26   :  { %813 = dma.done.wait [#allocation6], 8192  }
  0x27   :  { %814 = vsyncadd [#allocation6], 4294959104  ;;  %v649_v0 = vld [vmem:[#allocation5 + $0x4] ss:$8 sps:$4 sm:$0xff]   ;;  %v653_v2 = vld [vmem:[#allocation5] ss:$8 sps:$4 sm:$0xff]  }
  0x28   :  { %v651_v1 = vld [vmem:[#allocation5 + $0x104] ss:$8 sps:$4 sm:$0xff]   ;;  %460 = vmatprep.subr.bf16.mxu1 %v649_v0  ;;  %v654_v3 = vld [vmem:[#allocation5 + $0x100] ss:$8 sps:$4 sm:$0xff]   ;;  %v655_v4 = vld [vmem:[#allocation5 + $0x14] ss:$8 sps:$4 sm:$0xff]  }
  0x29   :  { %503 = vmatprep.subr.bf16.mxu0 %v651_v1  ;;  %461 = vmatpush1.bf16.msra.mxu1 %v653_v2  ;;  %v657_v5 = vld [vmem:[#allocation5 + $0x114] ss:$8 sps:$4 sm:$0xff]   ;;  %v659_v6 = vld [vmem:[#allocation5 + $0x10] ss:$8 sps:$4 sm:$0xff]   ;;  %v661_v8 = vld [vmem:[#allocation5 + $0x24] ss:$8 sps:$4 sm:$0xff]  }
  0x2a   :  { %504 = vmatpush1.bf16.msra.mxu0 %v654_v3  ;;  %462 = vmatprep.subr.bf16.mxu1 %v655_v4  ;;  %v660_v7 = vld [vmem:[#allocation5 + $0x110] ss:$8 sps:$4 sm:$0xff]   ;;  %v663_v9 = vld [vmem:[#allocation5 + $0x124] ss:$8 sps:$4 sm:$0xff]   ;;  %v665_v10 = vld [vmem:[#allocation5 + $0x20] ss:$8 sps:$4 sm:$0xff]  }
  0x2b   :  { %505 = vmatprep.subr.bf16.mxu0 %v657_v5  ;;  %v666_v11 = vld [vmem:[#allocation5 + $0x120] ss:$8 sps:$4 sm:$0xff]   ;;  %v667_v12 = vld [vmem:[#allocation5 + $0x34] ss:$8 sps:$4 sm:$0xff]   ;;  %v671_v14 = vld [vmem:[#allocation5 + $0x30] ss:$8 sps:$4 sm:$0xff]  }
  0x2c   :  { %v669_v13 = vld [vmem:[#allocation5 + $0x134] ss:$8 sps:$4 sm:$0xff]   ;;  %v672_v15 = vld [vmem:[#allocation5 + $0x130] ss:$8 sps:$4 sm:$0xff]   ;;  %v673_v16 = vld [vmem:[#allocation5 + $0x44] ss:$8 sps:$4 sm:$0xff]  }
  0x2d   :  { %463 = vmatpush1.bf16.msra.mxu1 %v659_v6  ;;  %v675_v17 = vld [vmem:[#allocation5 + $0x144] ss:$8 sps:$4 sm:$0xff]   ;;  %v677_v18 = vld [vmem:[#allocation5 + $0x40] ss:$8 sps:$4 sm:$0xff]   ;;  %v679_v20 = vld [vmem:[#allocation5 + $0x54] ss:$8 sps:$4 sm:$0xff]  }
  0x2e   :  { %506 = vmatpush1.bf16.msra.mxu0 %v660_v7  ;;  %464 = vmatprep.subr.bf16.mxu1 %v661_v8  ;;  %v678_v19 = vld [vmem:[#allocation5 + $0x140] ss:$8 sps:$4 sm:$0xff]   ;;  %v681_v21 = vld [vmem:[#allocation5 + $0x154] ss:$8 sps:$4 sm:$0xff]   ;;  %v683_v22 = vld [vmem:[#allocation5 + $0x50] ss:$8 sps:$4 sm:$0xff]  }
  0x2f   :  { %507 = vmatprep.subr.bf16.mxu0 %v663_v9  ;;  %v684_v23 = vld [vmem:[#allocation5 + $0x150] ss:$8 sps:$4 sm:$0xff]   ;;  %v685_v24 = vld [vmem:[#allocation5 + $0x64] ss:$8 sps:$4 sm:$0xff]   ;;  %v689_v26 = vld [vmem:[#allocation5 + $0x60] ss:$8 sps:$4 sm:$0xff]  }
  0x30   :  { %v687_v25 = vld [vmem:[#allocation5 + $0x164] ss:$8 sps:$4 sm:$0xff]   ;;  %v690_v27 = vld [vmem:[#allocation5 + $0x160] ss:$8 sps:$4 sm:$0xff]   ;;  %v691_v28 = vld [vmem:[#allocation5 + $0x74] ss:$8 sps:$4 sm:$0xff]  }
  0x31   :  { %465 = vmatpush1.bf16.msra.mxu1 %v665_v10  ;;  %v693_v29 = vld [vmem:[#allocation5 + $0x174] ss:$8 sps:$4 sm:$0xff]   ;;  %v695_v30 = vld [vmem:[#allocation5 + $0x70] ss:$8 sps:$4 sm:$0xff]   ;;  %v697_v32 = vld [vmem:[#allocation5 + $0x84] ss:$8 sps:$4 sm:$0xff]  }
  0x32   :  { %508 = vmatpush1.bf16.msra.mxu0 %v666_v11  ;;  %466 = vmatprep.subr.bf16.mxu1 %v667_v12  ;;  %v696_v31 = vld [vmem:[#allocation5 + $0x170] ss:$8 sps:$4 sm:$0xff]   ;;  %v699_v33 = vld [vmem:[#allocation5 + $0x184] ss:$8 sps:$4 sm:$0xff]   ;;  %v701_v34 = vld [vmem:[#allocation5 + $0x80] ss:$8 sps:$4 sm:$0xff]   ;;  %v122_v12 = vlaneseq }
  0x33   :  { %509 = vmatprep.subr.bf16.mxu0 %v669_v13  ;;  %v702_v35 = vld [vmem:[#allocation5 + $0x180] ss:$8 sps:$4 sm:$0xff]   ;;  %v703_v36 = vld [vmem:[#allocation5 + $0x94] ss:$8 sps:$4 sm:$0xff]   ;;  %v707_v38 = vld [vmem:[#allocation5 + $0x90] ss:$8 sps:$4 sm:$0xff]  }
  0x34   :  { %v705_v37 = vld [vmem:[#allocation5 + $0x194] ss:$8 sps:$4 sm:$0xff]   ;;  %v708_v39 = vld [vmem:[#allocation5 + $0x190] ss:$8 sps:$4 sm:$0xff]   ;;  %v709_v40 = vld [vmem:[#allocation5 + $0xa4] ss:$8 sps:$4 sm:$0xff]  }
  0x35   :  { %467 = vmatpush1.bf16.msra.mxu1 %v671_v14  ;;  %v711_v41 = vld [vmem:[#allocation5 + $0x1a4] ss:$8 sps:$4 sm:$0xff]   ;;  %v713_v42 = vld [vmem:[#allocation5 + $0xa0] ss:$8 sps:$4 sm:$0xff]   ;;  %v715_v44 = vld [vmem:[#allocation5 + $0xb4] ss:$8 sps:$4 sm:$0xff]  }
  0x36   :  { %510 = vmatpush1.bf16.msra.mxu0 %v672_v15  ;;  %468 = vmatprep.subr.bf16.mxu1 %v673_v16  ;;  %v714_v43 = vld [vmem:[#allocation5 + $0x1a0] ss:$8 sps:$4 sm:$0xff]   ;;  %v717_v45 = vld [vmem:[#allocation5 + $0x1b4] ss:$8 sps:$4 sm:$0xff]   ;;  %v719_v50 = vld [vmem:[#allocation5 + $0xb0] ss:$8 sps:$4 sm:$0xff]  }
  0x37   :  { %511 = vmatprep.subr.bf16.mxu0 %v675_v17  ;;  %v44_v46 = vld [vmem:[#allocation2 + $0x8] sm:$0xff]  ;;  %v46_v48 = vld [vmem:[#allocation2 + $0x18] sm:$0xff]  ;;  %v43_v6 = vld [vmem:[#allocation2] sm:$0xff]  ;;  %v123_v13 = vshrl.u32 %v122_v12, 7  ;;  %s823_s13 = smov [#allocation7]  }
  0x38   :  { %v48_v47 = vld [vmem:[#allocation2 + $0x28] sm:$0xff]  ;;  %v50_v49 = vld [vmem:[#allocation2 + $0x38] sm:$0xff]  ;;  %v47_v7 = vld [vmem:[#allocation2 + $0x20] sm:$0xff]  ;;  %s555_s14 = sshll.u32 %s823_s13, 4  ;;  %s556_s14 = int_to_ptr.vmem [resolvable:$true] %s555_s14 }
  0x39   :  { %469 = vmatpush1.bf16.msra.mxu1 %v677_v18  ;;  %v720_v51 = vld [vmem:[#allocation5 + $0x1b0] ss:$8 sps:$4 sm:$0xff]   ;;  %v52_v52 = vpack.c.bf16 %v48_v47, %v44_v46  ;;  %v54_v53 = vpack.c.bf16 %v50_v49, %v46_v48  ;;  %v721_v54 = vld [vmem:[#allocation5 + $0xc4] ss:$8 sps:$4 sm:$0xff]   ;;  %v725_v56 = vld [vmem:[#allocation5 + $0xc0] ss:$8 sps:$4 sm:$0xff]   ;;  %v51_v10 = vpack.c.bf16 %v47_v7, %v43_v6  ;;  %p794_p3 = scmp.lt.s32.totalorder %s556_s14, %s556_s14 }
  0x3a   :  { %512 = vmatpush1.bf16.msra.mxu0 %v678_v19  ;;  %470 = vmatprep.subr.bf16.mxu1 %v679_v20  ;;  %v723_v55 = vld [vmem:[#allocation5 + $0x1c4] ss:$8 sps:$4 sm:$0xff]   ;;  %v726_v57 = vld [vmem:[#allocation5 + $0x1c0] ss:$8 sps:$4 sm:$0xff]   ;;  %v727_v58 = vld [vmem:[#allocation5 + $0xd4] ss:$8 sps:$4 sm:$0xff]  }
  0x3b   :  { %513 = vmatprep.subr.bf16.mxu0 %v681_v21  ;;  %492 = vmatprep.mubr.bf16.mxu1 %v52_v52  ;;  %v729_v59 = vld [vmem:[#allocation5 + $0x1d4] ss:$8 sps:$4 sm:$0xff]   ;;  %v731_v60 = vld [vmem:[#allocation5 + $0xd0] ss:$8 sps:$4 sm:$0xff]   ;;  %v733_v62 = vld [vmem:[#allocation5 + $0xe4] ss:$8 sps:$4 sm:$0xff]  }
  0x3c   :  { %535 = vmatprep.mubr.bf16.mxu0 %v54_v53  ;;  %v732_v61 = vld [vmem:[#allocation5 + $0x1d0] ss:$8 sps:$4 sm:$0xff]   ;;  %v735_v63 = vld [vmem:[#allocation5 + $0x1e4] ss:$8 sps:$4 sm:$0xff]   ;;  %v737_v0 = vld [vmem:[#allocation5 + $0xe0] ss:$8 sps:$4 sm:$0xff]  }
  0x3d   :  { %471 = vmatpush1.bf16.msra.mxu1 %v683_v22  ;;  %v738_v1 = vld [vmem:[#allocation5 + $0x1e0] ss:$8 sps:$4 sm:$0xff]   ;;  %v739_v2 = vld [vmem:[#allocation5 + $0xf4] ss:$8 sps:$4 sm:$0xff]   ;;  %v743_v4 = vld [vmem:[#allocation5 + $0xf0] ss:$8 sps:$4 sm:$0xff]  }
  0x3e   :  { %514 = vmatpush1.bf16.msra.mxu0 %v684_v23  ;;  %472 = vmatprep.subr.bf16.mxu1 %v685_v24  ;;  %v741_v3 = vld [vmem:[#allocation5 + $0x1f4] ss:$8 sps:$4 sm:$0xff]   ;;  %v744_v5 = vld [vmem:[#allocation5 + $0x1f0] ss:$8 sps:$4 sm:$0xff]   ;;  %v119_v14 = vld [vmem:[%s887_s2] sm:$0x3] }
  0x3f   :  { %515 = vmatprep.subr.bf16.mxu0 %v687_v25  ;;  %v45_v8 = vld [vmem:[#allocation2 + $0x10] sm:$0xff]  ;;  %v120_v15 = vunpack.c.l.bf16 %v119_v14  ;;  %v124_v16 = vsub.s32 0, %v123_v13  ;;  %v128_v17 = vsub.s32 2, %v123_v13  ;;  %s789_s2 = scalar_lea.vmem %s556_s14, 512 }
  0x40   :  { %v49_v9 = vld [vmem:[#allocation2 + $0x30] sm:$0xff]  ;;  %p790_p2 = scmp.ne.s32.totalorder %s556_s14, %s789_s2  ;;  %p795_p4 = scmp.lt.s32.totalorder %s789_s2, %s789_s2 }
  0x41   :  { %473 = vmatpush1.bf16.msra.mxu1 %v689_v26  ;;  %v53_v11 = vpack.c.bf16 %v49_v9, %v45_v8  ;;  %v125_v18 = vrot.slane %v120_v15, %v124_v16  ;;  %v129_v19 = vrot.slane %v120_v15, %v128_v17 }
  0x42   :  { %516 = vmatpush1.bf16.msra.mxu0 %v690_v27  ;;  %474 = vmatprep.subr.bf16.mxu1 %v691_v28  ;;  %p796_p5 = por %p795_p4, %p794_p3 }
  0x43   :  { %517 = vmatprep.subr.bf16.mxu0 %v693_v29  ;;  %v135_v20 = vrot.slane %v125_v18, %v124_v16  ;;  %v139_v21 = vrot.slane %v129_v19, %v124_v16 }
  0x44   :  { %p797_p6 = pnand %p796_p5, %p790_p2 }
  0x45   :  { %475 = vmatpush1.bf16.msra.mxu1 %v695_v30 }
  0x46   :  { %518 = vmatpush1.bf16.msra.mxu0 %v696_v31  ;;  %476 = vmatprep.subr.bf16.mxu1 %v697_v32 }
  0x47   :  { %519 = vmatprep.subr.bf16.mxu0 %v699_v33 }
  0x49   :  { %477 = vmatpush1.bf16.msra.mxu1 %v701_v34 }
  0x4a   :  { %520 = vmatpush1.bf16.msra.mxu0 %v702_v35  ;;  %478 = vmatprep.subr.bf16.mxu1 %v703_v36 }
  0x4b   :  { %521 = vmatprep.subr.bf16.mxu0 %v705_v37 }
  0x4d   :  { %479 = vmatpush1.bf16.msra.mxu1 %v707_v38 }
  0x4e   :  { %522 = vmatpush1.bf16.msra.mxu0 %v708_v39  ;;  %480 = vmatprep.subr.bf16.mxu1 %v709_v40 }
  0x4f   :  { %523 = vmatprep.subr.bf16.mxu0 %v711_v41 }
  0x51   :  { %481 = vmatpush1.bf16.msra.mxu1 %v713_v42 }
  0x52   :  { %524 = vmatpush1.bf16.msra.mxu0 %v714_v43  ;;  %482 = vmatprep.subr.bf16.mxu1 %v715_v44 }
  0x53   :  { %525 = vmatprep.subr.bf16.mxu0 %v717_v45 }
  0x55   :  { %483 = vmatpush1.bf16.msra.mxu1 %v719_v50 }
  0x56   :  { %526 = vmatpush1.bf16.msra.mxu0 %v720_v51  ;;  %484 = vmatprep.subr.bf16.mxu1 %v721_v54 }
  0x57   :  { %527 = vmatprep.subr.bf16.mxu0 %v723_v55 }
  0x59   :  { %485 = vmatpush1.bf16.msra.mxu1 %v725_v56 }
  0x5a   :  { %528 = vmatpush1.bf16.msra.mxu0 %v726_v57  ;;  %486 = vmatprep.subr.bf16.mxu1 %v727_v58 }
  0x5b   :  { %529 = vmatprep.subr.bf16.mxu0 %v729_v59 }
  0x5d   :  { %487 = vmatpush1.bf16.msra.mxu1 %v731_v60 }
  0x5e   :  { %530 = vmatpush1.bf16.msra.mxu0 %v732_v61  ;;  %488 = vmatprep.subr.bf16.mxu1 %v733_v62 }
  0x5f   :  { %531 = vmatprep.subr.bf16.mxu0 %v735_v63 }
  0x61   :  { %489 = vmatpush1.bf16.msra.mxu1 %v737_v0 }
  0x62   :  { %532 = vmatpush1.bf16.msra.mxu0 %v738_v1  ;;  %490 = vmatprep.subr.bf16.mxu1 %v739_v2 }
  0x63   :  { %533 = vmatprep.subr.bf16.mxu0 %v741_v3 }
  0x65   :  { %491 = vmatpush1.bf16.msra.mxu1 %v743_v4 }
  0x66   :  { %534 = vmatpush1.bf16.msra.mxu0 %v744_v5 }
  0x68   :  { %493 = vmatmul.mubr.bf16.vlgmr.msra.gmra.mrb[0].mxu1 %v51_v10 }
  0x69   :  { %536 = vmatmul.mubr.bf16.vlgmr.msra.gmra.mrb[0].mxu0 %v53_v11 }
 0x13b   :  { %v494_v22 = vpop.f32.mrb[0].mxu1 }
 0x13c   :  { %v537_v23 = vpop.f32.mrb[0].mxu0  ;;  %v495_v24 = vadd.f32 %v494_v22, %v135_v20  ;;  %v496_v25 = vpop.f32.mrb[1].mxu1 }
 0x13d   :  { %v539_v26 = vpop.f32.mrb[1].mxu0  ;;  %v497_v27 = vadd.f32 %v496_v25, %v139_v21  ;;  %v498_v28 = vpop.f32.mrb[2].mxu1 }
 0x13e   :  { %v541_v29 = vpop.f32.mrb[2].mxu0  ;;  %v538_v30 = vadd.f32 %v537_v23, %v495_v24  ;;  %v499_v31 = vadd.f32 %v498_v28, %v135_v20  ;;  %v500_v32 = vpop.f32.mrb[3].mxu1 }
 0x13f   :  { %v543_v33 = vpop.f32.mrb[3].mxu0  ;;  %v540_v34 = vadd.f32 %v539_v26, %v497_v27  ;;  %v501_v35 = vadd.f32 %v500_v32, %v139_v21 }
 0x140   :  { %546 = vst [vmem:[#allocation7] sm:$0xff] %v538_v30  ;;  %v542_v36 = vadd.f32 %v541_v29, %v499_v31 }
 0x141   :  { %547 = vst [vmem:[#allocation7 + $0x8] sm:$0xff] %v540_v34  ;;  %v544_v37 = vadd.f32 %v543_v33, %v501_v35 }
 0x142   :  { %548 = vst [vmem:[#allocation7 + $0x10] sm:$0xff] %v542_v36 }
 0x143   :  { %549 = vst [vmem:[#allocation7 + $0x18] sm:$0xff] %v544_v37 }
 0x144   :  { %800 = shalt.err (!%p797_p6)
}
 0x145   :  { %s801_s17 = scalar_lea.hbm %s888_s3, 512 }
 0x146   :  { %p802_p7 = scmp.ne.s32.totalorder %s888_s3, %s801_s17  ;;  %p805_p8 = scmp.lt.u32.totalorder %s801_s17, %s888_s3 }
 0x148   :  { %p807_p9 = pnand %p805_p8, %p802_p7 }
 0x14a   :  { %810 = shalt.err (!%p807_p9)
}
 0x14b   :  { %s824_s22 = smov 256   ;;  %s825_s23 = smov 16  }
 0x14c   :  { %561 = dma.vmem_to_hbm [thread:$0]  %s556_s14, 512, %s888_s3, [#allocation4], %s824_s22, %s824_s22, %s825_s23  }
 0x14d   :  { %815 = dma.done.wait [#allocation4], 512  }
 0x14e   :  { %816 = vsyncadd [#allocation4], 4294966784 }
 0x14f   :  { %565 = vsyncpa [#allocation3], 1 }
 0x150   :  { %566 = vsyncpa [#allocation6], 1 }
 0x151   :  { %567 = vsyncpa [#allocation4], 1 }

</bundles_post_ra>
